<compile_context>
chip_gen: v7x
topology: tpu7x:2x2x1
jax: 0.10.0
libtpu: 0.0.40
codegen_flags: <defaults>
</compile_context>

<pallas_src>
import jax
import jax.numpy as jnp
from jax.experimental import pallas as pl
from jax.experimental.pallas import tpu as pltpu


# ---------------------------------------------------------------------------
# Pallas kernel: K-tiled matmul with f32 accumulator, bias folded into the
# finalize phase only.
# ---------------------------------------------------------------------------
def _linear_kernel(x_ref, w_ref, b_ref, o_ref, acc_ref):
    # x_ref: (tm, tk) bf16, w_ref: (tk, tn) bf16, b_ref: (1, tn) f32,
    # o_ref: (tm, tn) f32, acc_ref: (tm, tn) f32 scratch.
    k = pl.program_id(2)

    @pl.when(k == 0)
    def _():
        acc_ref[...] = jnp.zeros_like(acc_ref)

    acc_ref[...] += jnp.dot(x_ref[...], w_ref[...],
                            preferred_element_type=jnp.float32)

    @pl.when(k == pl.num_programs(2) - 1)
    def _():
        # Bias added exactly once, in f32, off the K reduction path.
        o_ref[...] = (acc_ref[...] + b_ref[...]).astype(o_ref.dtype)


def _round_up(x, m):
    return ((x + m - 1) // m) * m


def _tile_config(M, K, N):
    """Generation-specific tile targets + scoped-VMEM budget, clamped to the
    (padded) problem size.  tm stays a multiple of 8 (sublane), tn/tk stay
    multiples of 128 (lane) so block shapes always satisfy the (8,128) rule."""
    kind = jax.devices()[0].device_kind.lower()
    if "v7" in kind:
        # 64 MiB VMEM per TC: keep MXU-full 256-wide tiles but a smaller budget.
        tm_t, tn_t, tk_t, vmem = 256, 256, 512, 48 << 20
    elif "v5" in kind:
        # 4x128^2 MXU: 128-granular tiles already saturate it.
        tm_t, tn_t, tk_t, vmem = 128, 128, 512, 64 << 20
    else:  # v6e / default: 2x256^2 MXU, 128 MiB physical VMEM.
        tm_t, tn_t, tk_t, vmem = 256, 512, 512, 64 << 20
    tm = min(tm_t, _round_up(M, 8))
    tn = min(tn_t, _round_up(N, 128))
    tk = min(tk_t, _round_up(K, 128))
    return tm, tn, tk, vmem


def pallas_linear(x2d, w, b):
    """y = x2d @ w + b via a tiled Pallas GEMM.

    Inputs are padded so every dimension is an exact multiple of its tile
    (lane-dense N, K multiple of 128), cast to bf16 for the MXU, accumulated
    in f32, and the valid region is sliced back out afterward."""
    M, K = x2d.shape
    K2, N = w.shape
    assert K == K2

    tm, tn, tk, vmem_bytes = _tile_config(M, K, N)
    Mp, Kp, Np = _round_up(M, tm), _round_up(K, tk), _round_up(N, tn)

    x_bf = jnp.pad(x2d.astype(jnp.bfloat16), ((0, Mp - M), (0, Kp - K)))
    w_bf = jnp.pad(w.astype(jnp.bfloat16), ((0, Kp - K), (0, Np - N)))
    b_f = jnp.pad(b.astype(jnp.float32), ((0, 0), (0, Np - N)))

    grid = (Mp // tm, Np // tn, Kp // tk)

    out = pl.pallas_call(
        _linear_kernel,
        out_shape=jax.ShapeDtypeStruct((Mp, Np), jnp.float32),
        grid_spec=pltpu.PrefetchScalarGridSpec(
            num_scalar_prefetch=0,
            grid=grid,
            in_specs=[
                pl.BlockSpec((tm, tk), lambda i, j, k: (i, k)),
                pl.BlockSpec((tk, tn), lambda i, j, k: (k, j)),
                pl.BlockSpec((1, tn), lambda i, j, k: (0, j)),
            ],
            out_specs=pl.BlockSpec((tm, tn), lambda i, j, k: (i, j)),
            scratch_shapes=[pltpu.VMEM((tm, tn), jnp.float32)],
        ),
        compiler_params=pltpu.CompilerParams(
            dimension_semantics=("parallel", "parallel", "arbitrary"),
            vmem_limit_bytes=vmem_bytes,
        ),
        cost_estimate=pl.CostEstimate(
            flops=2 * Mp * Np * Kp,
            transcendentals=0,
            bytes_accessed=2 * (Mp * Kp + Kp * Np) + 4 * (Np + Mp * Np),
        ),
    )(x_bf, w_bf, b_f)

    return out[:M, :N]


# ---------------------------------------------------------------------------
# Representative inner model (deterministic init) + the ddp wrapper
# ---------------------------------------------------------------------------
class InnerLinearModel:
    """Synthetic stand-in for the arbitrary `model` handed to ddp(__init__)."""

    def __init__(self, hidden, key):
        kw, kb = jax.random.split(key)
        bound = 1.0 / (hidden ** 0.5)
        self.w = jax.random.uniform(kw, (hidden, hidden), jnp.float32,
                                    minval=-bound, maxval=bound)
        self.b = jax.random.uniform(kb, (1, hidden), jnp.float32,
                                    minval=-bound, maxval=bound)

    def __call__(self, x):
        # x: [batch, seq, hidden] -> [batch, seq, hidden]
        B, S, H = x.shape
        y2d = pallas_linear(x.reshape(B * S, H), self.w, self.b)
        return y2d.reshape(B, S, H)


class ddp:
    """Exact forward semantics of the PyTorch `ddp` module: forward(x) ==
    self.module(x)."""
    # TODO(synk): DDP's backward-pass gradient all-reduce (the only thing DDP
    # adds) has no forward-pass equivalent and is intentionally not modeled.

    def __init__(self, model):
        self.module = model

    def __call__(self, x):
        return self.module(x)


# ---------------------------------------------------------------------------
if __name__ == "__main__":
    key = jax.random.PRNGKey(0)
    k_x, k_m = jax.random.split(key)

    batch, seq, hidden = 2, 8, 32
    x = jax.random.normal(k_x, (batch, seq, hidden), jnp.float32)

    model = InnerLinearModel(hidden, k_m)
    wrapped = ddp(model)

    y = jax.block_until_ready(wrapped(x))

    # Pure-JAX reference with the same bf16 operand rounding (f32 accumulate).
    x_bf = x.reshape(-1, hidden).astype(jnp.bfloat16).astype(jnp.float32)
    w_bf = model.w.astype(jnp.bfloat16).astype(jnp.float32)
    y_ref = jnp.dot(x_bf, w_bf,
                    precision=jax.lax.Precision.HIGHEST) + model.b
    y_ref = y_ref.reshape(batch, seq, hidden)

    assert y.shape == (batch, seq, hidden)
    assert jnp.allclose(y, y_ref, atol=5e-3, rtol=5e-3), \
        float(jnp.max(jnp.abs(y - y_ref)))

    print("KERNEL_OK")
</pallas_src>

<mosaic_0001>
module attributes {stable_mosaic.version = 11 : i64} {
  func.func @_linear_kernel(%arg0: i32, %arg1: i32, %arg2: i32, %arg3: memref<16x128xbf16, #tpu.memory_space<vmem>>, %arg4: memref<128x128xbf16, #tpu.memory_space<vmem>>, %arg5: memref<1x128xf32, #tpu.memory_space<vmem>>, %arg6: memref<16x128xf32, #tpu.memory_space<vmem>>, %arg7: memref<16x128xf32, #tpu.memory_space<vmem>>) attributes {dimension_semantics = [#tpu.dimension_semantics<parallel>, #tpu.dimension_semantics<parallel>, #tpu.dimension_semantics<arbitrary>], iteration_bounds = array<i64: 1, 1, 1>, scalar_prefetch = 0 : i64, scratch_operands = 1 : i64, tpu.core_type = #tpu.core_type<tc>, window_params = [{transform_indices = @transform_0, window_bounds = array<i64: 16, 128>}, {transform_indices = @transform_1, window_bounds = array<i64: 128, 128>}, {transform_indices = @transform_2, window_bounds = array<i64: 1, 128>}, {transform_indices = @transform_3, window_bounds = array<i64: 16, 128>}]} {
    %c0_i32 = arith.constant 0 : i32
    %0 = arith.cmpi eq, %arg2, %c0_i32 : i32
    %1 = arith.extui %0 : i1 to i32
    %c0_i32_0 = arith.constant 0 : i32
    %2 = arith.cmpi ne, %1, %c0_i32_0 : i32
    scf.if %2 {
      %cst_10 = arith.constant 0.000000e+00 : f32
      %12 = vector.broadcast %cst_10 : f32 to vector<16x128xf32>
      %c0_11 = arith.constant 0 : index
      %c0_12 = arith.constant 0 : index
      %13 = vector.load %arg7[%c0_11, %c0_12] : memref<16x128xf32, #tpu.memory_space<vmem>>, vector<16x128xf32>
      tpu.vector_store %arg7[%c0_11, %c0_12], %12 {strides = array<i32>} : memref<16x128xf32, #tpu.memory_space<vmem>>, vector<16x128xf32>,
    } else {
    }
    %c0 = arith.constant 0 : index
    %c0_1 = arith.constant 0 : index
    %3 = vector.load %arg7[%c0, %c0_1] : memref<16x128xf32, #tpu.memory_space<vmem>>, vector<16x128xf32>
    %c0_2 = arith.constant 0 : index
    %c0_3 = arith.constant 0 : index
    %4 = vector.load %arg3[%c0_2, %c0_3] : memref<16x128xbf16, #tpu.memory_space<vmem>>, vector<16x128xbf16>
    %c0_4 = arith.constant 0 : index
    %c0_5 = arith.constant 0 : index
    %5 = vector.load %arg4[%c0_4, %c0_5] : memref<128x128xbf16, #tpu.memory_space<vmem>>, vector<128x128xbf16>
    %cst = arith.constant dense<0.000000e+00> : vector<16x128xf32>
    %6 = tpu.matmul %4, %5, %cst {dimension_numbers = #tpu.dot_dimension_numbers<[1], [0], [0], [1], [0, 0, 1, 1], [], []>} : vector<16x128xbf16>, vector<128x128xbf16>, vector<16x128xf32> -> vector<16x128xf32>
    %7 = arith.addf %3, %6 : vector<16x128xf32>
    %c0_6 = arith.constant 0 : index
    %c0_7 = arith.constant 0 : index
    %8 = vector.load %arg7[%c0_6, %c0_7] : memref<16x128xf32, #tpu.memory_space<vmem>>, vector<16x128xf32>
    tpu.vector_store %arg7[%c0_6, %c0_7], %7 {strides = array<i32>} : memref<16x128xf32, #tpu.memory_space<vmem>>, vector<16x128xf32>,
    %c0_i32_8 = arith.constant 0 : i32
    %9 = arith.cmpi eq, %arg2, %c0_i32_8 : i32
    %10 = arith.extui %9 : i1 to i32
    %c0_i32_9 = arith.constant 0 : i32
    %11 = arith.cmpi ne, %10, %c0_i32_9 : i32
    scf.if %11 {
      %c0_10 = arith.constant 0 : index
      %c0_11 = arith.constant 0 : index
      %12 = vector.load %arg7[%c0_10, %c0_11] : memref<16x128xf32, #tpu.memory_space<vmem>>, vector<16x128xf32>
      %c0_12 = arith.constant 0 : index
      %c0_13 = arith.constant 0 : index
      %13 = vector.load %arg5[%c0_12, %c0_13] : memref<1x128xf32, #tpu.memory_space<vmem>>, vector<1x128xf32>
      %14 = vector.broadcast %13 : vector<1x128xf32> to vector<16x128xf32>
      %15 = arith.addf %12, %14 : vector<16x128xf32>
      %c0_14 = arith.constant 0 : index
      %c0_15 = arith.constant 0 : index
      %16 = vector.load %arg6[%c0_14, %c0_15] : memref<16x128xf32, #tpu.memory_space<vmem>>, vector<16x128xf32>
      tpu.vector_store %arg6[%c0_14, %c0_15], %15 {strides = array<i32>} : memref<16x128xf32, #tpu.memory_space<vmem>>, vector<16x128xf32>,
    } else {
    }
    return
  }
  func.func @transform_0(%arg0: i32, %arg1: i32, %arg2: i32) -> (i32, i32) {
    %c0_i32 = arith.constant 0 : i32
    return %arg0, %arg2 : i32, i32
  }
  func.func @transform_1(%arg0: i32, %arg1: i32, %arg2: i32) -> (i32, i32) {
    %c0_i32 = arith.constant 0 : i32
    return %arg2, %arg1 : i32, i32
  }
  func.func @transform_2(%arg0: i32, %arg1: i32, %arg2: i32) -> (i32, i32) {
    %c0_i32 = arith.constant 0 : i32
    %c0_i32_0 = arith.constant 0 : i32
    return %c0_i32, %arg1 : i32, i32
  }
  func.func @transform_3(%arg0: i32, %arg1: i32, %arg2: i32) -> (i32, i32) {
    %c0_i32 = arith.constant 0 : i32
    return %arg0, %arg1 : i32, i32
  }
}

</mosaic_0001>

<bundles_post_ra>
// kernel: tpu_custom_call.1
= control target key start
LH: loop header
LB: loop body
LE: loop exit
PB: predicated region body
PF: predicated region fallthrough
CT: control target
= control target key end

     0   :  { %8 = vsyncpa [#allocation4], 0  ;;  %s451_s0 = inlined_call_operand.hbm [shape: bf16[16,128], index: 0, kind: input, shape index: {}]   ;;  %s452_s1 = inlined_call_operand.hbm [shape: bf16[128,128], index: 1, kind: input, shape index: {}]   ;;  %s453_s2 = inlined_call_operand.hbm [shape: f32[1,128], index: 2, kind: input, shape index: {}]   ;;  %s454_s3 = inlined_call_operand.hbm [shape: f32[16,128], index: 3, kind: output, shape index: {}]  }
   0x1   :  { %9 = vsyncpa [#allocation7], 0 }
   0x2   :  { %10 = vsyncpa [#allocation5], 0  ;;  %s366_s12 = smov [#allocation6]   ;;  %s367_s14 = smov [#allocation3]  }
   0x3   :  { %s28_s13 = sshll.u32 %s366_s12, 4  ;;  %s16_s15 = sshll.u32 %s367_s14, 4  ;;  %s29_s13 = int_to_ptr.vmem [resolvable:$true] %s28_s13  ;;  %s396_s15 = int_to_ptr.vmem [resolvable:$true] %s16_s15 }
   0x4   :  { %s272_s18 = scalar_lea.hbm %s452_s1, 1024 }
   0x5   :  { %p273_p0 = scmp.ne.s32.totalorder %s452_s1, %s272_s18  ;;  %p276_p1 = scmp.lt.u32.totalorder %s272_s18, %s452_s1 }
   0x7   :  { %p278_p2 = pnand %p276_p1, %p273_p0 }
   0x9   :  { %281 = shalt.err (!%p278_p2)
}
   0xa   :  { %s282_s23 = scalar_lea.vmem %s29_s13, 1024  ;;  %p287_p4 = scmp.lt.s32.totalorder %s29_s13, %s29_s13 }
   0xb   :  { %p283_p3 = scmp.ne.s32.totalorder %s29_s13, %s282_s23  ;;  %p288_p5 = scmp.lt.s32.totalorder %s282_s23, %s282_s23 }
   0xd   :  { %p289_p6 = por %p288_p5, %p287_p4 }
   0xf   :  { %p290_p7 = pnand %p289_p6, %p283_p3 }
  0x11   :  { %293 = shalt.err (!%p290_p7)
}
  0x12   :  { %s368_s24 = smov 64   ;;  %s369_s25 = smov 4  }
  0x13   :  { %34 = dma.hbm_to_vmem [thread:$0]  %s452_s1, 1024, %s29_s13, [#allocation7], %s368_s24, %s368_s24, %s369_s25  }
  0x14   :  { %s294_s30 = scalar_lea.hbm %s451_s0, 128 }
  0x15   :  { %p295_p8 = scmp.ne.s32.totalorder %s451_s0, %s294_s30  ;;  %p298_p9 = scmp.lt.u32.totalorder %s294_s30, %s451_s0 }
  0x17   :  { %p300_p10 = pnand %p298_p9, %p295_p8 }
  0x19   :  { %303 = shalt.err (!%p300_p10)
}
  0x1a   :  { %s304_s8 = scalar_lea.vmem %s396_s15, 128  ;;  %p309_p12 = scmp.lt.s32.totalorder %s396_s15, %s396_s15 }
  0x1b   :  { %p305_p11 = scmp.ne.s32.totalorder %s396_s15, %s304_s8  ;;  %p310_p13 = scmp.lt.s32.totalorder %s304_s8, %s304_s8 }
  0x1d   :  { %p311_p0 = por %p310_p13, %p309_p12 }
  0x1f   :  { %p312_p1 = pnand %p311_p0, %p305_p11 }
  0x21   :  { %315 = shalt.err (!%p312_p1)
}
  0x22   :  { %22 = dma.hbm_to_vmem [thread:$0]  %s451_s0, 128, %s396_s15, [#allocation4], %s368_s24, %s368_s24, %s369_s25  }
  0x23   :  { %s370_s10 = smov [#allocation8]   ;;  %s316_s14 = scalar_lea.hbm %s453_s2, 16 }
  0x24   :  { %s41_s11 = sshll.u32 %s370_s10, 4  ;;  %p317_p2 = scmp.ne.s32.totalorder %s453_s2, %s316_s14  ;;  %s42_s11 = int_to_ptr.vmem [resolvable:$true] %s41_s11 }
  0x25   :  { %p320_p3 = scmp.lt.u32.totalorder %s316_s14, %s453_s2 }
  0x27   :  { %p322_p4 = pnand %p320_p3, %p317_p2 }
  0x29   :  { %325 = shalt.err (!%p322_p4)
}
  0x2a   :  { %s326_s20 = scalar_lea.vmem %s42_s11, 16  ;;  %s330_s0 = scalar_lea.vmem %s42_s11, 32 }
  0x2b   :  { %p327_p5 = scmp.ne.s32.totalorder %s42_s11, %s326_s20  ;;  %p331_p6 = scmp.lt.s32.totalorder %s42_s11, %s42_s11 }
  0x2c   :  { %p332_p7 = scmp.lt.s32.totalorder %s330_s0, %s326_s20 }
  0x2e   :  { %p333_p8 = por %p332_p7, %p331_p6 }
  0x30   :  { %p334_p9 = pnand %p333_p8, %p327_p5 }
  0x32   :  { %337 = shalt.err (!%p334_p9)
}
  0x33   :  { %44 = dma.hbm_to_vmem [thread:$0]  %s453_s2, 16, %s42_s11, [#allocation7]  }
  0x34   :  { %360 = dma.done.wait [#allocation4], 128  }
  0x35   :  { %361 = vsyncadd [#allocation4], 4294967168 }
  0x36   :  { %362 = dma.done.wait [#allocation7], 1040  }
  0x37   :  { %363 = vsyncadd [#allocation7], 4294966256  ;;  %v371_v0 = vmov 0.0   ;;  %vm372_vm0 = vmmov 0   ;;  %v263_v1 = vld [vmem:[#allocation6] sm:$0xff]   ;;  %v264_v2 = vld [vmem:[#allocation6 + $0x8] sm:$0xff]  }
  0x38   :  { %233 = vmatprep.subr.bf16.mxu0 %v371_v0  ;;  %249 = vmatprep.mubr.msk.bf16.mxu0 %vm372_vm0, %v371_v0  ;;  %v265_v3 = vld [vmem:[#allocation6 + $0x10] sm:$0xff]   ;;  %v266_v4 = vld [vmem:[#allocation6 + $0x18] sm:$0xff]   ;;  %v267_v5 = vld [vmem:[#allocation6 + $0x20] sm:$0xff]   ;;  %s373_s2 = smov [#allocation9]  }
  0x39   :  { %234 = vmatpush3.bf16.msra.mxu0 %v263_v1  ;;  %v268_v6 = vld [vmem:[#allocation6 + $0x28] sm:$0xff]   ;;  %v269_v7 = vld [vmem:[#allocation6 + $0x30] sm:$0xff]   ;;  %v270_v8 = vld [vmem:[#allocation6 + $0x38] sm:$0xff]   ;;  %s201_s22 = sshll.u32 %s373_s2, 4  ;;  %s202_s22 = int_to_ptr.vmem [resolvable:$true] %s201_s22 }
  0x3a   :  { %235 = vmatprep.subr.bf16.mxu0 %v371_v0  ;;  %v271_v9 = vld [vmem:[#allocation3] sm:$0xff]   ;;  %v223_v10 = vld [vmem:[#allocation8] ss:$0 sm:$0xff]  ;;  %s338_s23 = scalar_lea.vmem %s202_s22, 256  ;;  %p343_p11 = scmp.lt.s32.totalorder %s202_s22, %s202_s22 }
  0x3b   :  { %p339_p10 = scmp.ne.s32.totalorder %s202_s22, %s338_s23  ;;  %p344_p12 = scmp.lt.s32.totalorder %s338_s23, %s338_s23 }
  0x3d   :  { %236 = vmatpush3.bf16.msra.mxu0 %v264_v2  ;;  %p345_p13 = por %p344_p12, %p343_p11 }
  0x3e   :  { %237 = vmatprep.subr.bf16.mxu0 %v371_v0 }
  0x3f   :  { %p346_p0 = pnand %p345_p13, %p339_p10 }
  0x41   :  { %238 = vmatpush3.bf16.msra.mxu0 %v265_v3 }
  0x42   :  { %239 = vmatprep.subr.bf16.mxu0 %v371_v0 }
  0x45   :  { %240 = vmatpush3.bf16.msra.mxu0 %v266_v4 }
  0x46   :  { %241 = vmatprep.subr.bf16.mxu0 %v371_v0 }
  0x49   :  { %242 = vmatpush3.bf16.msra.mxu0 %v267_v5 }
  0x4a   :  { %243 = vmatprep.subr.bf16.mxu0 %v371_v0 }
  0x4d   :  { %244 = vmatpush3.bf16.msra.mxu0 %v268_v6 }
  0x4e   :  { %245 = vmatprep.subr.bf16.mxu0 %v371_v0 }
  0x51   :  { %246 = vmatpush3.bf16.msra.mxu0 %v269_v7 }
  0x52   :  { %247 = vmatprep.subr.bf16.mxu0 %v371_v0 }
  0x55   :  { %248 = vmatpush3.bf16.msra.mxu0 %v270_v8 }
  0x58   :  { %250 = vmatmul.mubr.bf16.vlgmr.msra.gmra.mrb[0].mxu0 %v271_v9 }
 0x12b   :  { %v169_v11 = vpop.f32.mrb[0].mxu0 }
 0x12c   :  { %v192_v12 = vadd.f32 %v223_v10, %v169_v11  ;;  %v251_v13 = vpop.f32.mrb[1].mxu0 }
 0x12d   :  { %v172_v14 = vpop.f32.mrb[2].mxu0 }
 0x12e   :  { %194 = vst [vmem:[#allocation9] sm:$0xff] %v192_v12  ;;  %v193_v15 = vadd.f32 %v223_v10, %v172_v14  ;;  %v252_v16 = vpop.f32.mrb[3].mxu0 }
 0x130   :  { %195 = vst [vmem:[#allocation9 + $0x8] sm:$0xff] %v193_v15 }
 0x131   :  { %349 = shalt.err (!%p346_p0)
}
 0x132   :  { %s350_s26 = scalar_lea.hbm %s454_s3, 256 }
 0x133   :  { %p351_p1 = scmp.ne.s32.totalorder %s454_s3, %s350_s26  ;;  %p354_p2 = scmp.lt.u32.totalorder %s350_s26, %s454_s3 }
 0x135   :  { %p356_p3 = pnand %p354_p2, %p351_p1 }
 0x137   :  { %359 = shalt.err (!%p356_p3)
}
 0x138   :  { %s374_s4 = smov 128   ;;  %s375_s5 = smov 8  }
 0x139   :  { %207 = dma.vmem_to_hbm [thread:$0]  %s202_s22, 256, %s454_s3, [#allocation5], %s374_s4, %s374_s4, %s375_s5  }
 0x13a   :  { %364 = dma.done.wait [#allocation5], 256  }
 0x13b   :  { %365 = vsyncadd [#allocation5], 4294967040 }
 0x13c   :  { %211 = vsyncpa [#allocation4], 1 }
 0x13d   :  { %212 = vsyncpa [#allocation7], 1 }
 0x13e   :  { %213 = vsyncpa [#allocation5], 1 }

</bundles_post_ra>
